<compile_context>
chip_gen: v6e
topology: v6e:2x2x1
jax: 0.10.0
libtpu: 0.0.40
codegen_flags: <defaults>
</compile_context>

<pallas_src>
import functools

import jax
import jax.numpy as jnp
from jax.experimental import pallas as pl
from jax.experimental.pallas import tpu as pltpu


def _round_up(x, m):
    return (x + m - 1) // m * m


def _vmem_capacity_bytes():
    """Physical per-TensorCore VMEM, with a conservative fallback."""
    try:
        info = pltpu.get_tpu_info()
        cap = getattr(info, "vmem_capacity_bytes", None)
        if cap:
            return int(cap)
    except Exception:
        pass
    return 64 * 1024 * 1024  # conservative: v7x per-TC physical VMEM


def _hinton_kld_kernel(s_ref, t_ref, lbl_ref, out_ref, *, T, B, label_smoothing):
    i = pl.program_id(0)
    TB, C = s_ref.shape
    inv_T = 1.0 / float(T)

    s = s_ref[...].astype(jnp.float32)   # [TB, C] student logits
    t = t_ref[...].astype(jnp.float32)   # [TB, C] teacher logits
    lbl = lbl_ref[...]                   # [TB, 1] int32 labels

    # ---- student: one row-max shared by tempered & untempered softmaxes ----
    s_max = jnp.max(s, axis=1, keepdims=True)
    s_sh = s - s_max
    # untempered log-partition (for CE)
    log_z_s1 = jnp.log(jnp.sum(jnp.exp(s_sh), axis=1, keepdims=True))
    # tempered shift: max(s/T) == max(s)/T since T > 0
    s_T = s_sh * inv_T
    log_z_sT = jnp.log(jnp.sum(jnp.exp(s_T), axis=1, keepdims=True))

    # ---- teacher tempered softmax pieces ----
    t_max = jnp.max(t, axis=1, keepdims=True)
    t_T = (t - t_max) * inv_T
    e_t = jnp.exp(t_T)
    z_t = jnp.sum(e_t, axis=1, keepdims=True)
    log_z_t = jnp.log(z_t)

    # ---- per-row KLD: sum_c p_t * (log p_t - log p_s)
    #        = sum_c e_t * (t_T - s_T) / z_t + (log z_sT - log z_t)
    # (algebraic form removes the [TB,C]-wide p_t division; only a [TB,1] divide remains)
    dot = jnp.sum(e_t * (t_T - s_T), axis=1, keepdims=True)
    kld_row = dot / z_t + (log_z_sT - log_z_t)
    # TODO(synk): if a bundle dump shows the XLU slot saturated (v6e/v7x), these
    # lane-axis sums can be offloaded to the idle MXU via ones-vector matmuls.

    # ---- per-row CE with label smoothing; no [TB,C] log_pred materialization ----
    # log_pred[label] = s_sh[label] - log_z_s1 ; sum_c log_pred = sum_c s_sh - C*log_z_s1
    lane = jax.lax.broadcasted_iota(jnp.int32, (1, C), 1)      # (1,C) broadcast vs (TB,1)
    lp_label = (jnp.sum(jnp.where(lane == lbl, s_sh, 0.0), axis=1, keepdims=True)
                - log_z_s1)
    if float(label_smoothing) > 0.0 and C > 1:
        on = 1.0 - float(label_smoothing)
        off = float(label_smoothing) / (C - 1)
        sum_lp = jnp.sum(s_sh, axis=1, keepdims=True) - float(C) * log_z_s1
        ce_row = -((on - off) * lp_label + off * sum_lp)
    else:
        ce_row = -lp_label

    # ---- mask padded tail rows (global row index >= B contributes 0) ----
    row = jax.lax.broadcasted_iota(jnp.int32, (TB, 1), 0) + i * TB
    valid = row < B
    kld_part = jnp.sum(jnp.where(valid, kld_row, 0.0))
    ce_part = jnp.sum(jnp.where(valid, ce_row, 0.0))

    # ---- lane-dense partial-sum output (unmasked store):
    #      lane 0 = hinton partial, lane 1 = ce partial (replicated over sublanes)
    out_lane = jax.lax.broadcasted_iota(jnp.int32, out_ref.shape, 2)
    out_ref[...] = (jnp.where(out_lane == 0, kld_part, 0.0)
                    + jnp.where(out_lane == 1, ce_part, 0.0))


def hinton_kld_loss(logit_s, logit_t, labels, *, T, alpha, num_classes, label_smoothing):
    """Pallas-backed HintonKLD.calculate_loss. Returns a scalar float32."""
    B, C = logit_s.shape
    assert C == num_classes
    labels2d = labels.astype(jnp.int32).reshape(B, 1)

    in_bytes = jnp.dtype(logit_s.dtype).itemsize
    # Sublane granule for the logit blocks: f32 -> 8, bf16 -> 16, int8/fp8 -> 32.
    sub = max(8, 32 // in_bytes)

    # --- per-generation VMEM budget (v7x: 64 MiB physical; v5e/v6e: 128 MiB) ---
    vmem_phys = _vmem_capacity_bytes()
    vmem_budget = int(vmem_phys * 0.65)

    # --- TB sizing: count the double-buffered pipeline inputs AND the in-kernel
    #     [TB,C] f32 temporaries (conservative ~8 live tiles). No artificial cap.
    pipeline_per_row = 2 * 2 * C * in_bytes          # 2 logit operands x 2 buffers
    temps_per_row = 8 * C * 4                        # f32 temporaries inside the body
    per_row = pipeline_per_row + temps_per_row + 16  # + label column / row scalars
    tb_cap = max(sub, (vmem_budget // per_row) // sub * sub)

    TB = min(tb_cap, _round_up(B, sub))
    # Keep >=2 tiles whenever possible so the "parallel" grid axis can shard
    # across v7x's two TensorCores (harmless ~0.35us extra step on v5e/v6e).
    if B > sub:
        TB = min(TB, _round_up(pl.cdiv(B, 2), sub))
    num_tiles = pl.cdiv(B, TB)

    # Explicit scoped-VMEM limit: generous slack above the estimated working set,
    # capped below physical VMEM for the generation.
    vmem_limit = int(min(vmem_phys - (16 << 20), max(vmem_budget * 3 // 2, 32 << 20)))

    kernel = functools.partial(
        _hinton_kld_kernel, T=float(T), B=B, label_smoothing=float(label_smoothing))

    partials = pl.pallas_call(
        kernel,
        out_shape=jax.ShapeDtypeStruct((num_tiles, 8, 128), jnp.float32),
        grid=(num_tiles,),
        in_specs=[
            pl.BlockSpec((TB, C), lambda i: (i, 0)),
            pl.BlockSpec((TB, C), lambda i: (i, 0)),
            pl.BlockSpec((TB, 1), lambda i: (i, 0)),
        ],
        out_specs=pl.BlockSpec((1, 8, 128), lambda i: (i, 0, 0)),
        compiler_params=pltpu.CompilerParams(
            dimension_semantics=("parallel",),
            vmem_limit_bytes=vmem_limit),
    )(logit_s, logit_t, labels2d)

    hinton = jnp.sum(partials[:, 0, 0]) / B * (float(T) ** 2)
    ce = jnp.sum(partials[:, 0, 1]) / B
    return (1.0 - float(alpha)) * ce + float(alpha) * hinton
    # TODO(synk): for num_classes < 128, a lane-dense (batch-on-lanes) layout would
    # use the VPU/EUP ~8x better; not implemented (would need a wrapper transpose).


def _reference_loss(logit_s, logit_t, labels, *, T, alpha, num_classes, label_smoothing):
    """Pure-JAX reference mirroring the PyTorch code, for a correctness check."""
    log_p_s = jax.nn.log_softmax(logit_s / T, axis=1)
    log_p_t = jax.nn.log_softmax(logit_t / T, axis=1)
    p_t = jnp.exp(log_p_t)
    hinton = jnp.sum(p_t * (log_p_t - log_p_s)) / logit_s.shape[0] * T ** 2
    onehot = jax.nn.one_hot(labels, num_classes, dtype=jnp.float32)
    if label_smoothing > 0.0:
        target = jnp.where(onehot != 0.0, onehot * (1.0 - label_smoothing),
                           label_smoothing / (num_classes - 1.0))
    else:
        target = onehot
    pred = jax.nn.log_softmax(logit_s, axis=1)
    ce = jnp.mean(jnp.sum(-target * pred, axis=1))
    return (1.0 - alpha) * ce + alpha * hinton


if __name__ == "__main__":
    # HintonKLD hyper-parameters (deterministic, in-script; no checkpoint load).
    # TODO(synk): teacher/student network forwards are external modules passed to
    # forward(); only the loss math owned by HintonKLD/CrossEntropy is kernelized.
    T = 4.0
    alpha = 0.9
    label_smoothing = 0.1

    key = jax.random.PRNGKey(0)

    # Case 1: small f32 batch, exact tile fit, label smoothing on.
    B1, C1 = 8, 16
    k_s, k_t, k_l, key = jax.random.split(key, 4)
    s1 = jax.random.normal(k_s, (B1, C1), dtype=jnp.float32)
    t1 = jax.random.normal(k_t, (B1, C1), dtype=jnp.float32)
    l1 = jax.random.randint(k_l, (B1,), 0, C1, dtype=jnp.int32)
    out1 = jax.block_until_ready(hinton_kld_loss(
        s1, t1, l1, T=T, alpha=alpha, num_classes=C1, label_smoothing=label_smoothing))
    ref1 = _reference_loss(s1, t1, l1, T=T, alpha=alpha, num_classes=C1,
                           label_smoothing=label_smoothing)
    assert jnp.allclose(out1, ref1, rtol=1e-5, atol=1e-5), (out1, ref1)

    # Case 2: ragged batch (masked tail tile), >=2 tiles, no label smoothing.
    B2, C2 = 50, 40
    k_s, k_t, k_l, key = jax.random.split(key, 4)
    s2 = jax.random.normal(k_s, (B2, C2), dtype=jnp.float32) * 3.0
    t2 = jax.random.normal(k_t, (B2, C2), dtype=jnp.float32) * 3.0
    l2 = jax.random.randint(k_l, (B2,), 0, C2, dtype=jnp.int32)
    out2 = jax.block_until_ready(hinton_kld_loss(
        s2, t2, l2, T=2.0, alpha=0.5, num_classes=C2, label_smoothing=0.0))
    ref2 = _reference_loss(s2, t2, l2, T=2.0, alpha=0.5, num_classes=C2,
                           label_smoothing=0.0)
    assert jnp.allclose(out2, ref2, rtol=1e-5, atol=1e-5), (out2, ref2)

    # Case 3: bf16 logits (halved HBM traffic), 16-row sublane granule, 2 tiles.
    B3, C3 = 24, 16
    k_s, k_t, k_l, key = jax.random.split(key, 4)
    s3 = jax.random.normal(k_s, (B3, C3), dtype=jnp.float32).astype(jnp.bfloat16)
    t3 = jax.random.normal(k_t, (B3, C3), dtype=jnp.float32).astype(jnp.bfloat16)
    l3 = jax.random.randint(k_l, (B3,), 0, C3, dtype=jnp.int32)
    out3 = jax.block_until_ready(hinton_kld_loss(
        s3, t3, l3, T=T, alpha=alpha, num_classes=C3, label_smoothing=label_smoothing))
    ref3 = _reference_loss(s3.astype(jnp.float32), t3.astype(jnp.float32), l3,
                           T=T, alpha=alpha, num_classes=C3,
                           label_smoothing=label_smoothing)
    assert jnp.allclose(out3, ref3, rtol=1e-4, atol=1e-4), (out3, ref3)

    print("KERNEL_OK")
</pallas_src>

<mosaic_0001>
module attributes {stable_mosaic.version = 11 : i64} {
  func.func @_hinton_kld_kernel(%arg0: i32, %arg1: memref<8x16xf32, #tpu.memory_space<vmem>>, %arg2: memref<8x16xf32, #tpu.memory_space<vmem>>, %arg3: memref<8x1xi32, #tpu.memory_space<vmem>>, %arg4: memref<1x8x128xf32, #tpu.memory_space<vmem>>) attributes {dimension_semantics = [#tpu.dimension_semantics<parallel>], iteration_bounds = array<i64: 1>, scalar_prefetch = 0 : i64, scratch_operands = 0 : i64, tpu.core_type = #tpu.core_type<tc>, window_params = [{transform_indices = @transform_0, window_bounds = array<i64: 8, 16>}, {transform_indices = @transform_1, window_bounds = array<i64: 8, 16>}, {transform_indices = @transform_2, window_bounds = array<i64: 8, 1>}, {transform_indices = @transform_3, window_bounds = array<i64: 1, 8, 128>}]} {
    %c0 = arith.constant 0 : index
    %c0_0 = arith.constant 0 : index
    %0 = vector.load %arg1[%c0, %c0_0] : memref<8x16xf32, #tpu.memory_space<vmem>>, vector<8x16xf32>
    %c0_1 = arith.constant 0 : index
    %c0_2 = arith.constant 0 : index
    %1 = vector.load %arg2[%c0_1, %c0_2] : memref<8x16xf32, #tpu.memory_space<vmem>>, vector<8x16xf32>
    %c0_3 = arith.constant 0 : index
    %c0_4 = arith.constant 0 : index
    %2 = vector.load %arg3[%c0_3, %c0_4] : memref<8x1xi32, #tpu.memory_space<vmem>>, vector<8x1xi32>
    %cst = arith.constant dense<0xFF800000> : vector<8xf32>
    %3 = vector.multi_reduction <maximumf>, %0, %cst [1] : vector<8x16xf32> to vector<8xf32>
    %4 = vector.shape_cast %3 : vector<8xf32> to vector<8x1xf32>
    %5 = vector.broadcast %4 : vector<8x1xf32> to vector<8x16xf32>
    %6 = arith.subf %0, %5 : vector<8x16xf32>
    %7 = math.exp %6 : vector<8x16xf32>
    %cst_5 = arith.constant dense<0.000000e+00> : vector<8xf32>
    %8 = vector.multi_reduction <add>, %7, %cst_5 [1] : vector<8x16xf32> to vector<8xf32>
    %9 = vector.shape_cast %8 : vector<8xf32> to vector<8x1xf32>
    %10 = math.log %9 : vector<8x1xf32>
    %cst_6 = arith.constant 2.500000e-01 : f32
    %11 = vector.broadcast %cst_6 : f32 to vector<8x16xf32>
    %12 = arith.mulf %6, %11 : vector<8x16xf32>
    %13 = math.exp %12 : vector<8x16xf32>
    %cst_7 = arith.constant dense<0.000000e+00> : vector<8xf32>
    %14 = vector.multi_reduction <add>, %13, %cst_7 [1] : vector<8x16xf32> to vector<8xf32>
    %15 = vector.shape_cast %14 : vector<8xf32> to vector<8x1xf32>
    %16 = math.log %15 : vector<8x1xf32>
    %cst_8 = arith.constant dense<0xFF800000> : vector<8xf32>
    %17 = vector.multi_reduction <maximumf>, %1, %cst_8 [1] : vector<8x16xf32> to vector<8xf32>
    %18 = vector.shape_cast %17 : vector<8xf32> to vector<8x1xf32>
    %19 = vector.broadcast %18 : vector<8x1xf32> to vector<8x16xf32>
    %20 = arith.subf %1, %19 : vector<8x16xf32>
    %cst_9 = arith.constant 2.500000e-01 : f32
    %21 = vector.broadcast %cst_9 : f32 to vector<8x16xf32>
    %22 = arith.mulf %20, %21 : vector<8x16xf32>
    %23 = math.exp %22 : vector<8x16xf32>
    %cst_10 = arith.constant dense<0.000000e+00> : vector<8xf32>
    %24 = vector.multi_reduction <add>, %23, %cst_10 [1] : vector<8x16xf32> to vector<8xf32>
    %25 = vector.shape_cast %24 : vector<8xf32> to vector<8x1xf32>
    %26 = math.log %25 : vector<8x1xf32>
    %27 = arith.subf %22, %12 : vector<8x16xf32>
    %28 = arith.mulf %23, %27 : vector<8x16xf32>
    %cst_11 = arith.constant dense<0.000000e+00> : vector<8xf32>
    %29 = vector.multi_reduction <add>, %28, %cst_11 [1] : vector<8x16xf32> to vector<8xf32>
    %30 = vector.shape_cast %29 : vector<8xf32> to vector<8x1xf32>
    %31 = arith.divf %30, %25 : vector<8x1xf32>
    %32 = arith.subf %16, %26 : vector<8x1xf32>
    %33 = arith.addf %31, %32 : vector<8x1xf32>
    %34 = tpu.iota {dimensions = array<i32: 1>} : vector<1x16xi32>
    %35 = vector.broadcast %34 : vector<1x16xi32> to vector<8x16xi32>
    %36 = vector.broadcast %2 : vector<8x1xi32> to vector<8x16xi32>
    %37 = arith.cmpi eq, %35, %36 : vector<8x16xi32>
    %cst_12 = arith.constant 0.000000e+00 : f32
    %38 = vector.broadcast %cst_12 : f32 to vector<8x16xf32>
    %39 = arith.select %37, %6, %38 : vector<8x16xi1>, vector<8x16xf32>
    %cst_13 = arith.constant dense<0.000000e+00> : vector<8xf32>
    %40 = vector.multi_reduction <add>, %39, %cst_13 [1] : vector<8x16xf32> to vector<8xf32>
    %41 = vector.shape_cast %40 : vector<8xf32> to vector<8x1xf32>
    %42 = arith.subf %41, %10 : vector<8x1xf32>
    %cst_14 = arith.constant dense<0.000000e+00> : vector<8xf32>
    %43 = vector.multi_reduction <add>, %6, %cst_14 [1] : vector<8x16xf32> to vector<8xf32>
    %44 = vector.shape_cast %43 : vector<8xf32> to vector<8x1xf32>
    %cst_15 = arith.constant 1.600000e+01 : f32
    %45 = vector.broadcast %cst_15 : f32 to vector<8x1xf32>
    %46 = arith.mulf %45, %10 : vector<8x1xf32>
    %47 = arith.subf %44, %46 : vector<8x1xf32>
    %cst_16 = arith.constant 0.893333315 : f32
    %48 = vector.broadcast %cst_16 : f32 to vector<8x1xf32>
    %49 = arith.mulf %48, %42 : vector<8x1xf32>
    %cst_17 = arith.constant 0.00666666683 : f32
    %50 = vector.broadcast %cst_17 : f32 to vector<8x1xf32>
    %51 = arith.mulf %50, %47 : vector<8x1xf32>
    %52 = arith.addf %49, %51 : vector<8x1xf32>
    %cst_18 = arith.constant 0.000000e+00 : f32
    %53 = vector.broadcast %cst_18 : f32 to vector<8x1xf32>
    %54 = arith.subf %53, %52 : vector<8x1xf32>
    %55 = tpu.iota {dimensions = array<i32: 0>} : vector<8x1xi32>
    %c8_i32 = arith.constant 8 : i32
    %56 = arith.muli %arg0, %c8_i32 : i32
    %57 = vector.broadcast %56 : i32 to vector<8x1xi32>
    %58 = arith.addi %55, %57 : vector<8x1xi32>
    %c8_i32_19 = arith.constant 8 : i32
    %59 = vector.broadcast %c8_i32_19 : i32 to vector<8x1xi32>
    %60 = arith.cmpi slt, %58, %59 : vector<8x1xi32>
    %cst_20 = arith.constant 0.000000e+00 : f32
    %61 = vector.broadcast %cst_20 : f32 to vector<8x1xf32>
    %62 = arith.select %60, %33, %61 : vector<8x1xi1>, vector<8x1xf32>
    %63 = vector.shape_cast %62 : vector<8x1xf32> to vector<1x8x1xf32>
    %cst_21 = arith.constant dense<0.000000e+00> : vector<1xf32>
    %64 = vector.multi_reduction <add>, %63, %cst_21 [1, 2] : vector<1x8x1xf32> to vector<1xf32>
    %65 = vector.shape_cast %64 : vector<1xf32> to vector<1x1x1xf32>
    %66 = vector.extract %65[0, 0, 0] : f32 from vector<1x1x1xf32>
    %cst_22 = arith.constant 0.000000e+00 : f32
    %67 = vector.broadcast %cst_22 : f32 to vector<8x1xf32>
    %68 = arith.select %60, %54, %67 : vector<8x1xi1>, vector<8x1xf32>
    %69 = vector.shape_cast %68 : vector<8x1xf32> to vector<1x8x1xf32>
    %cst_23 = arith.constant dense<0.000000e+00> : vector<1xf32>
    %70 = vector.multi_reduction <add>, %69, %cst_23 [1, 2] : vector<1x8x1xf32> to vector<1xf32>
    %71 = vector.shape_cast %70 : vector<1xf32> to vector<1x1x1xf32>
    %72 = vector.extract %71[0, 0, 0] : f32 from vector<1x1x1xf32>
    %73 = tpu.iota {dimensions = array<i32: 2>} : vector<1x8x128xi32>
    %c0_i32 = arith.constant 0 : i32
    %74 = vector.broadcast %c0_i32 : i32 to vector<1x8x128xi32>
    %75 = arith.cmpi eq, %73, %74 : vector<1x8x128xi32>
    %cst_24 = arith.constant 0.000000e+00 : f32
    %76 = vector.broadcast %66 : f32 to vector<1x8x128xf32>
    %77 = vector.broadcast %cst_24 : f32 to vector<1x8x128xf32>
    %78 = arith.select %75, %76, %77 : vector<1x8x128xi1>, vector<1x8x128xf32>
    %c1_i32 = arith.constant 1 : i32
    %79 = vector.broadcast %c1_i32 : i32 to vector<1x8x128xi32>
    %80 = arith.cmpi eq, %73, %79 : vector<1x8x128xi32>
    %cst_25 = arith.constant 0.000000e+00 : f32
    %81 = vector.broadcast %72 : f32 to vector<1x8x128xf32>
    %82 = vector.broadcast %cst_25 : f32 to vector<1x8x128xf32>
    %83 = arith.select %80, %81, %82 : vector<1x8x128xi1>, vector<1x8x128xf32>
    %84 = arith.addf %78, %83 : vector<1x8x128xf32>
    %c0_26 = arith.constant 0 : index
    %c0_27 = arith.constant 0 : index
    %c0_28 = arith.constant 0 : index
    %85 = vector.load %arg4[%c0_26, %c0_27, %c0_28] : memref<1x8x128xf32, #tpu.memory_space<vmem>>, vector<1x8x128xf32>
    tpu.vector_store %arg4[%c0_26, %c0_27, %c0_28], %84 {strides = array<i32>} : memref<1x8x128xf32, #tpu.memory_space<vmem>>, vector<1x8x128xf32>,
    return
  }
  func.func @transform_0(%arg0: i32) -> (i32, i32) {
    %c0_i32 = arith.constant 0 : i32
    %c0_i32_0 = arith.constant 0 : i32
    return %arg0, %c0_i32 : i32, i32
  }
  func.func @transform_1(%arg0: i32) -> (i32, i32) {
    %c0_i32 = arith.constant 0 : i32
    %c0_i32_0 = arith.constant 0 : i32
    return %arg0, %c0_i32 : i32, i32
  }
  func.func @transform_2(%arg0: i32) -> (i32, i32) {
    %c0_i32 = arith.constant 0 : i32
    %c0_i32_0 = arith.constant 0 : i32
    return %arg0, %c0_i32 : i32, i32
  }
  func.func @transform_3(%arg0: i32) -> (i32, i32, i32) {
    %c0_i32 = arith.constant 0 : i32
    %c0_i32_0 = arith.constant 0 : i32
    %c0_i32_1 = arith.constant 0 : i32
    return %arg0, %c0_i32, %c0_i32_0 : i32, i32, i32
  }
}

</mosaic_0001>

<bundles_post_ra>
// kernel: tpu_custom_call.1
= control target key start
LH: loop header
LB: loop body
LE: loop exit
PB: predicated region body
PF: predicated region fallthrough
CT: control target
= control target key end

     0   :  { %8 = vsyncpa [#allocation3], 0  ;;  %s258_s0 = inlined_call_operand.vmem [shape: f32[8,16], index: 0, kind: input, shape index: {}]   ;;  %s259_s1 = inlined_call_operand.hbm [shape: f32[8,16], index: 1, kind: input, shape index: {}]   ;;  %s260_s2 = inlined_call_operand.vmem [shape: s32[8,1], index: 2, kind: input, shape index: {}]   ;;  %s261_s3 = inlined_call_operand.hbm [shape: f32[1,8,128], index: 3, kind: output, shape index: {}]  }
   0x1   :  { %9 = vsyncpa [#allocation4], 0  ;;  %s210_s12 = smov [#allocation2]  }
   0x2   :  { %s18_s13 = sshll.u32 %s210_s12, 4  ;;  %s19_s13 = int_to_ptr.vmem [resolvable:$true] %s18_s13 }
   0x3   :  { %s174_s14 = scalar_lea.vmem %s19_s13, 128  ;;  %p179_p1 = scmp.lt.s32.totalorder %s19_s13, %s19_s13 }
   0x4   :  { %p175_p0 = scmp.ne.s32.totalorder %s19_s13, %s174_s14  ;;  %p180_p2 = scmp.lt.s32.totalorder %s174_s14, %s174_s14 }
   0x6   :  { %p181_p3 = por %p180_p2, %p179_p1 }
   0x8   :  { %p182_p4 = pnand %p181_p3, %p175_p0 }
   0xa   :  { %185 = shalt.err (!%p182_p4)
}
   0xb   :  { %21 = dma.hbm_to_vmem [thread:$0]  %s259_s1, 128, %s19_s13, [#allocation3]  }
   0xc   :  { %206 = dma.done.wait [#allocation3], 128  }
   0xd   :  { %207 = vsyncadd [#allocation3], 4294967168  ;;  %v211_v0 = vmov 0   ;;  %vm30_vm0 = vcmask 130048   ;;  %v27_v1 = vld [vmem:[%s258_s0] sm:$0xff]  ;;  %v71_v15 = vlaneseq  ;;  %vm98_vm2 = vcmask 7168  }
   0xe   :  { %150 = vset.pattern.permute.xlu1 %v211_v0  ;;  %151 = vset.pattern.permute.xlu0 %v211_v0  ;;  %v28_v2 = vld [vmem:[#allocation2] sm:$0xff]  ;;  %v31_v4 = vsel %vm30_vm0, %v27_v1, -inf }
   0xf   :  { %v29_v3 = vld [vmem:[%s260_s2] sm:$0xff]  ;;  %32 = vmax.xlane.f32.xlu0 %v31_v4  ;;  %v50_v5 = vsel %vm30_vm0, %v28_v2, -inf  ;;  %v244_v17 = vand.u32 127, %v71_v15  ;;  %s212_s2 = smov [#allocation5]  }
  0x10   :  { %74 = vperm.xlu1 %150, %v29_v3   ;;  %s134_s21 = sshll.u32 %s212_s2, 4  ;;  %s135_s21 = int_to_ptr.vmem [resolvable:$true] %s134_s21 }
  0x11   :  { %vm120_vm3 = vcmp.eq.s32.totalorder %v244_v17, 0  ;;  %vm123_vm4 = vcmp.eq.s32.totalorder %v244_v17, 1  ;;  %s186_s22 = scalar_lea.vmem %s135_s21, 128  ;;  %p191_p6 = scmp.lt.s32.totalorder %s135_s21, %s135_s21 }
  0x12   :  { %p187_p5 = scmp.ne.s32.totalorder %s135_s21, %s186_s22  ;;  %p192_p7 = scmp.lt.s32.totalorder %s186_s22, %s186_s22 }
  0x13   :  { %51 = vmax.xlane.f32.xlu0 %v50_v5 }
  0x14   :  { %p193_p8 = por %p192_p7, %p191_p6 }
  0x16   :  { %p194_p9 = pnand %p193_p8, %p187_p5 }
  0x8b   :  { %v75_v20 = vpop.permute.xlu1 %74 }
  0x8c   :  { %vm76_vm1 = vcmp.eq.s32.totalorder %v244_v17, %v75_v20 }
  0x98   :  { %v33_v6 = vpop.xlane.xlu0 %32 }
  0x99   :  { %v34_v7 = vsub.f32 %v27_v1, %v33_v6 }
  0x9b   :  { %v35_v8 = vmul.f32 1.442695, %v34_v7  ;;  %v42_v9 = vmul.f32 0.25, %v34_v7  ;;  %v77_v24 = vsel %vm76_vm1, %v34_v7, 0.0  ;;  %v82_v27 = vsel %vm30_vm0, %v34_v7, 0.0 }
  0x9c   :  { %v52_v10 = vpop.xlane.xlu0 %51  ;;  %v78_v25 = vsel %vm30_vm0, %v77_v24, 0.0 }
  0x9d   :  { %152 = vpow2.f32 %v35_v8  ;;  %v43_v11 = vmul.f32 1.442695, %v42_v9  ;;  %v53_v12 = vsub.f32 %v28_v2, %v52_v10 }
  0x9f   :  { %154 = vpow2.f32 %v43_v11  ;;  %v54_v13 = vmul.f32 0.25, %v53_v12 }
  0xa1   :  { %v55_v14 = vmul.f32 1.442695, %v54_v13  ;;  %v62_v26 = vsub.f32 %v54_v13, %v42_v9 }
  0xa3   :  { %156 = vpow2.f32 %v55_v14 }
  0xaa   :  { %v153_v16 = vpop.eup %152 }
  0xab   :  { %v37_v18 = vsel %vm30_vm0, %v153_v16, 0.0 }
  0xac   :  { %v155_v19 = vpop.eup %154  ;;  %38 = vadd.xlane.f32.xlu1 %v37_v18 }
  0xad   :  { %v45_v21 = vsel %vm30_vm0, %v155_v19, 0.0 }
  0xae   :  { %46 = vadd.xlane.f32.xlu0 %v45_v21 }
  0xb0   :  { %v157_v22 = vpop.eup %156 }
  0xb1   :  { %v57_v23 = vsel %vm30_vm0, %v157_v22, 0.0  ;;  %v63_v28 = vmul.f32 %v157_v22, %v62_v26 }
  0xb2   :  { %58 = vadd.xlane.f32.xlu0 %v57_v23 }
  0xb3   :  { %v64_v29 = vsel %vm30_vm0, %v63_v28, 0.0 }
  0xb6   :  { %79 = vadd.xlane.f32.xlu0 %v78_v25 }
  0xba   :  { %83 = vadd.xlane.f32.xlu0 %v82_v27 }
  0xbe   :  { %65 = vadd.xlane.f32.xlu0 %v64_v29 }
 0x135   :  { %v39_v30 = vpop.xlane.xlu1 %38 }
 0x136   :  { %158 = vlog2.f32 %v39_v30 }
 0x137   :  { %v47_v31 = vpop.xlane.xlu0 %46 }
 0x138   :  { %160 = vlog2.f32 %v47_v31 }
 0x13b   :  { %v59_v32 = vpop.xlane.xlu0 %58 }
 0x13c   :  { %162 = vlog2.f32 %v59_v32 }
 0x13d   :  { %164 = vrcp.f32 %v59_v32 }
 0x13f   :  { %v80_v33 = vpop.xlane.xlu0 %79 }
 0x143   :  { %v159_v34 = vpop.eup %158  ;;  %v84_v36 = vpop.xlane.xlu0 %83 }
 0x144   :  { %v41_v35 = vmul.f32 0.6931472, %v159_v34 }
 0x145   :  { %v161_v37 = vpop.eup %160 }
 0x146   :  { %v81_v38 = vsub.f32 %v80_v33, %v41_v35  ;;  %v85_v39 = vmul.f32 16.0, %v41_v35  ;;  %v49_v42 = vmul.f32 0.6931472, %v161_v37 }
 0x147   :  { %v66_v47 = vpop.xlane.xlu0 %65 }
 0x148   :  { %v86_v40 = vsub.f32 %v84_v36, %v85_v39  ;;  %v87_v45 = vmul.f32 0.8933333, %v81_v38 }
 0x149   :  { %v163_v41 = vpop.eup %162 }
 0x14a   :  { %v165_v43 = vpop.eup %164  ;;  %v61_v44 = vmul.f32 0.6931472, %v163_v41  ;;  %v88_v46 = vmul.f32 0.006666667, %v86_v40 }
 0x14b   :  { %v68_v48 = vmul.f32 %v165_v43, %v66_v47 }
 0x14c   :  { %v69_v49 = vsub.f32 %v49_v42, %v61_v44  ;;  %v89_v50 = vadd.f32 %v88_v46, %v87_v45 }
 0x14e   :  { %v70_v51 = vadd.f32 %v69_v49, %v68_v48  ;;  %v90_v53 = vsub.f32 0.0, %v89_v50 }
 0x150   :  { %v99_v52 = vsel %vm98_vm2, %v70_v51, 0.0  ;;  %v110_v54 = vsel %vm98_vm2, %v90_v53, 0.0 }
 0x151   :  { %100 = vadd.xlane.f32.xlu0 %v99_v52 }
 0x155   :  { %111 = vadd.xlane.f32.xlu0 %v110_v54 }
 0x1da   :  { %v101_v55 = vpop.xlane.xlu0 %100 }
 0x1db   :  { %v102_v56 = vrot.slane %v101_v55, 4 }
 0x1dd   :  { %v103_v57 = vadd.f32 %v102_v56, %v101_v55 }
 0x1de   :  { %v112_v58 = vpop.xlane.xlu0 %111 }
 0x1df   :  { %v104_v59 = vrot.slane %v103_v57, 2  ;;  %v113_v60 = vrot.slane %v112_v58, 4 }
 0x1e1   :  { %v114_v61 = vadd.f32 %v113_v60, %v112_v58  ;;  %v105_v62 = vadd.f32 %v104_v59, %v103_v57 }
 0x1e3   :  { %v115_v63 = vrot.slane %v114_v61, 2  ;;  %v106_v0 = vrot.slane %v105_v62, 1 }
 0x1e5   :  { %v116_v1 = vadd.f32 %v115_v63, %v114_v61  ;;  %v107_v2 = vadd.f32 %v106_v0, %v105_v62 }
 0x1e7   :  { %143 = vpush %v107_v2  ;;  %v117_v3 = vrot.slane %v116_v1, 1 }
 0x1e9   :  { %v118_v4 = vadd.f32 %v117_v3, %v116_v1 }
 0x1eb   :  { %145 = vpush %v118_v4 }
 0x218   :  { %s144_s0 = spop %143 }
 0x219   :  { %v121_v5 = vstv %s144_s0 }
 0x21a   :  { %v122_v7 = vsel %vm120_vm3, %v121_v5, 0.0 }
 0x21c   :  { %s146_s1 = spop %145 }
 0x21d   :  { %v124_v6 = vstv %s146_s1 }
 0x21e   :  { %v125_v8 = vsel %vm123_vm4, %v124_v6, 0.0 }
 0x21f   :  { %v126_v9 = vadd.f32 %v125_v8, %v122_v7 }
 0x221   :  { %127 = vst [vmem:[#allocation5] sm:$0xff] %v126_v9 }
 0x222   :  { %197 = shalt.err (!%p194_p9)
}
 0x223   :  { %137 = dma.vmem_to_hbm [thread:$0]  %s135_s21, 128, %s261_s3, [#allocation4]  }
 0x224   :  { %208 = dma.done.wait [#allocation4], 128  }
 0x225   :  { %209 = vsyncadd [#allocation4], 4294967168 }
 0x226   :  { %141 = vsyncpa [#allocation3], 1 }
 0x227   :  { %142 = vsyncpa [#allocation4], 1 }

</bundles_post_ra>
